<compile_context>
chip_gen: v6e
topology: v6e:2x2x1
jax: 0.10.0
libtpu: 0.0.40
codegen_flags: <defaults>
</compile_context>

<pallas_src>
import functools

import jax
import jax.numpy as jnp
from jax.experimental import pallas as pl
from jax.experimental.pallas import tpu as pltpu


_FALLBACK_BLOCK_BYTES = 4 * 1024 * 1024


def _vmem_plan():
    """Per-generation (block byte budget, physical VMEM capacity)."""
    try:
        cap = int(pltpu.get_tpu_info().vmem_capacity_bytes)
    except Exception:  # non-TPU tracing / older jax: stay conservative
        return _FALLBACK_BLOCK_BYTES, 64 * 1024 * 1024
    if cap >= 100 * 1024 * 1024:       # v5e / v6e: 128 MiB physical VMEM
        block = 8 * 1024 * 1024
    else:                               # v7x: 64 MiB physical per TensorCore
        block = 6 * 1024 * 1024
    return block, cap


def _choose_fold(n, d):
    """Largest k dividing n with k*d <= ~512: free lane-dense fold (n,d)->(n/k,k*d)."""
    if d >= 128 or n <= 1:
        return 1
    kmax = max(1, 512 // d)
    for k in range(min(kmax, n), 1, -1):
        if n % k == 0:
            return k
    return 1


def _row_norm_partial_kernel(x_ref, g_ref, out_ref, *, k, tn, valid_rows,
                             scale, mask_tail):
    """Partial sum over this tile of per-(original-)row L2 perturbation norms.

    x_ref block is (tn, w) with k original feature rows folded into the lane
    axis (w = k*d).  Per original row: norm = scale * sqrt(count_nonzero).
    The scalar partial is broadcast into the (1, 8, 128) output block; the
    wrapper reads [:, 0, 0] and sums across tiles.
    """
    x = x_ref[...]                                       # (tn, w), input dtype
    zero = jnp.zeros((), x.dtype)
    nz = (x != zero).astype(x.dtype)                     # 1 where perturbed

    if mask_tail:
        # Last tile extends past the array: OOB rows hold undefined data, so
        # zero them in the mask before any counting.
        row = (jax.lax.broadcasted_iota(jnp.int32, x.shape, 0)
               + pl.program_id(0) * tn)
        nz = jnp.where(row < valid_rows, nz, zero)

    if k == 1:
        # Single group: one lane reduction is already a single pass.
        counts = jnp.sum(nz.astype(jnp.float32), axis=-1, keepdims=True)
    else:
        # MXU segment-sum: (tn, w) x (w, k) -> (tn, k) exact integer counts.
        counts = jnp.dot(nz, g_ref[...], preferred_element_type=jnp.float32)

    norm_sum = jnp.sum(jnp.sqrt(counts))
    out_ref[...] = jnp.full(out_ref.shape, scale * norm_sum, jnp.float32)


def _layer_norm_sum(x2d, scale, block_budget, vmem_cap):
    """Sum over rows of ||PGD(x) - x||_2 (norm over last dim) for one layer."""
    n, d = x2d.shape

    k = _choose_fold(n, d)
    w = k * d
    m = n // k
    xf = x2d.reshape(m, w)                               # free row-major view

    itemsize = x2d.dtype.itemsize
    bytes_per_row = w * itemsize
    rows_budget = max(8, (block_budget // max(bytes_per_row, 1)) // 8 * 8)
    if rows_budget >= m:
        tn = m                                           # single full block
    else:
        tn = rows_budget                                 # multiple of 8
    grid = pl.cdiv(m, tn)
    mask_tail = (m % tn) != 0

    # Constant (w, k) 0/1 grouping matrix: lane j belongs to group j // d.
    grp = (jnp.arange(w, dtype=jnp.int32)[:, None] // d
           == jnp.arange(k, dtype=jnp.int32)[None, :])
    g_mat = grp.astype(x2d.dtype)

    block_bytes = tn * w * itemsize
    vmem_limit = int(min(vmem_cap // 2,
                         max(2 * block_bytes + 8 * 1024 * 1024,
                             16 * 1024 * 1024)))

    kernel = functools.partial(_row_norm_partial_kernel, k=k, tn=tn,
                               valid_rows=m, scale=scale, mask_tail=mask_tail)
    partials = pl.pallas_call(
        kernel,
        out_shape=jax.ShapeDtypeStruct((grid, 8, 128), jnp.float32),
        grid_spec=pltpu.PrefetchScalarGridSpec(
            num_scalar_prefetch=0,
            grid=(grid,),
            in_specs=[pl.BlockSpec((tn, w), lambda i: (i, 0)),
                      pl.BlockSpec((w, k), lambda i: (0, 0))],
            out_specs=pl.BlockSpec((1, 8, 128), lambda i: (i, 0, 0)),
        ),
        compiler_params=pltpu.CompilerParams(
            dimension_semantics=("parallel",),
            vmem_limit_bytes=vmem_limit),
    )(xf, g_mat)
    return jnp.sum(partials[:, 0, 0])


def adversarial_robustness_loss(
    feature_activations,
    safety_scores,            # unused by the math, kept for signature parity
    epsilon: float = 0.1,
    attack_steps: int = 5,
    alpha: float = 0.01,
    max_block_bytes=None,     # testing hook: cap the per-block byte budget
):
    del safety_scores
    assert alpha >= 0.0 and epsilon >= 0.0, (
        "closed-form PGD requires alpha >= 0 and epsilon >= 0")
    scale = float(min(attack_steps * alpha, epsilon))

    block_budget, vmem_cap = _vmem_plan()
    if max_block_bytes is not None:
        block_budget = max(8, int(max_block_bytes))

    total = jnp.float32(0.0)
    for act in feature_activations:
        d = act.shape[-1]
        x2d = act.reshape(-1, d)          # no dtype cast / HBM copy
        n_rows = x2d.shape[0]
        total = total + (_layer_norm_sum(x2d, scale, block_budget, vmem_cap)
                         / jnp.float32(n_rows))
    return total / jnp.float32(len(feature_activations))


def _reference_loss(feature_activations, epsilon, attack_steps, alpha):
    """Pure-JAX iterative PGD reference, for validation."""
    total = 0.0
    for act in feature_activations:
        x = act.astype(jnp.float32)
        p = x
        for _ in range(attack_steps):
            p = p + alpha * jnp.sign(p)
            p = x + jnp.clip(p - x, -epsilon, epsilon)
        total = total + jnp.mean(jnp.linalg.norm(p - x, axis=-1))
    return total / len(feature_activations)


if __name__ == "__main__":
    key = jax.random.PRNGKey(0)
    k1, k2, k3, k4 = jax.random.split(key, 4)

    # Small shapes exercising: k=16 lane fold (d=32), broadened fold with d
    # not dividing 128 (d=48 -> k=8), and a ragged-row bf16 layer with d>=128.
    feature_activations = [
        jax.random.normal(k1, (2, 8, 32), jnp.float32),
        jax.random.normal(k2, (2, 8, 48), jnp.float32),
        jax.random.normal(k3, (2, 7, 256), jnp.bfloat16),
    ]
    safety_scores = jax.random.uniform(k4, (2,), jnp.float32)

    ref = _reference_loss(feature_activations, 0.1, 5, 0.01)

    loss = jax.block_until_ready(
        adversarial_robustness_loss(feature_activations, safety_scores))
    assert jnp.allclose(loss, ref, rtol=1e-4, atol=1e-5), (loss, ref)

    # Tiny block budget forces grid > 1 on the ragged layer and exercises the
    # in-kernel tail masking path.
    loss_small = jax.block_until_ready(
        adversarial_robustness_loss(feature_activations, safety_scores,
                                    max_block_bytes=4096))
    assert jnp.allclose(loss_small, ref, rtol=1e-4, atol=1e-5), (loss_small, ref)

    print("KERNEL_OK")
</pallas_src>

<mosaic_0001>
module attributes {stable_mosaic.version = 11 : i64} {
  func.func @_row_norm_partial_kernel(%arg0: i32, %arg1: memref<1x512xf32, #tpu.memory_space<vmem>>, %arg2: memref<512x16xf32, #tpu.memory_space<vmem>>, %arg3: memref<1x8x128xf32, #tpu.memory_space<vmem>>) attributes {dimension_semantics = [#tpu.dimension_semantics<parallel>], iteration_bounds = array<i64: 1>, scalar_prefetch = 0 : i64, scratch_operands = 0 : i64, tpu.core_type = #tpu.core_type<tc>, window_params = [{transform_indices = @transform_0, window_bounds = array<i64: 1, 512>}, {pipeline_mode = #tpu.pipeline_mode<synchronous>, transform_indices = @transform_1, window_bounds = array<i64: 512, 16>}, {transform_indices = @transform_2, window_bounds = array<i64: 1, 8, 128>}]} {
    %c0 = arith.constant 0 : index
    %c0_0 = arith.constant 0 : index
    %0 = vector.load %arg1[%c0, %c0_0] : memref<1x512xf32, #tpu.memory_space<vmem>>, vector<1x512xf32>
    %cst = arith.constant 0.000000e+00 : f32
    %1 = vector.broadcast %cst : f32 to vector<1x512xf32>
    %2 = arith.cmpf one, %0, %1 : vector<1x512xf32>
    %3 = arith.extui %2 : vector<1x512xi1> to vector<1x512xi32>
    %4 = arith.sitofp %3 : vector<1x512xi32> to vector<1x512xf32>
    %c0_1 = arith.constant 0 : index
    %c0_2 = arith.constant 0 : index
    %5 = vector.load %arg2[%c0_1, %c0_2] : memref<512x16xf32, #tpu.memory_space<vmem>>, vector<512x16xf32>
    %cst_3 = arith.constant dense<0.000000e+00> : vector<1x16xf32>
    %6 = tpu.matmul %4, %5, %cst_3 {dimension_numbers = #tpu.dot_dimension_numbers<[1], [0], [0], [1], [0, 0, 1, 1], [], []>} : vector<1x512xf32>, vector<512x16xf32>, vector<1x16xf32> -> vector<1x16xf32>
    %7 = math.sqrt %6 : vector<1x16xf32>
    %8 = vector.shape_cast %7 : vector<1x16xf32> to vector<1x1x16xf32>
    %cst_4 = arith.constant dense<0.000000e+00> : vector<1xf32>
    %9 = vector.multi_reduction <add>, %8, %cst_4 [1, 2] : vector<1x1x16xf32> to vector<1xf32>
    %10 = vector.shape_cast %9 : vector<1xf32> to vector<1x1x1xf32>
    %11 = vector.extract %10[0, 0, 0] : f32 from vector<1x1x1xf32>
    %cst_5 = arith.constant 5.000000e-02 : f32
    %12 = arith.mulf %cst_5, %11 : f32
    %13 = vector.broadcast %12 : f32 to vector<1x8x128xf32>
    %c0_6 = arith.constant 0 : index
    %c0_7 = arith.constant 0 : index
    %c0_8 = arith.constant 0 : index
    %14 = vector.load %arg3[%c0_6, %c0_7, %c0_8] : memref<1x8x128xf32, #tpu.memory_space<vmem>>, vector<1x8x128xf32>
    tpu.vector_store %arg3[%c0_6, %c0_7, %c0_8], %13 {strides = array<i32>} : memref<1x8x128xf32, #tpu.memory_space<vmem>>, vector<1x8x128xf32>,
    return
  }
  func.func @transform_0(%arg0: i32) -> (i32, i32) {
    %c0_i32 = arith.constant 0 : i32
    %c0_i32_0 = arith.constant 0 : i32
    return %arg0, %c0_i32 : i32, i32
  }
  func.func @transform_1(%arg0: i32) -> (i32, i32) {
    %c0_i32 = arith.constant 0 : i32
    %c0_i32_0 = arith.constant 0 : i32
    %c0_i32_1 = arith.constant 0 : i32
    return %c0_i32, %c0_i32_0 : i32, i32
  }
  func.func @transform_2(%arg0: i32) -> (i32, i32, i32) {
    %c0_i32 = arith.constant 0 : i32
    %c0_i32_0 = arith.constant 0 : i32
    %c0_i32_1 = arith.constant 0 : i32
    return %arg0, %c0_i32, %c0_i32_0 : i32, i32, i32
  }
}

</mosaic_0001>

<bundles_post_ra>
// kernel: tpu_custom_call.1
= control target key start
LH: loop header
LB: loop body
LE: loop exit
PB: predicated region body
PF: predicated region fallthrough
CT: control target
= control target key end

     0   :  { %v81_v38 = vlaneseq  ;;  %s590_s0 = inlined_call_operand.vmem [shape: f32[1,512], index: 0, kind: input, shape index: {}]   ;;  %s591_s1 = inlined_call_operand.vmem [shape: f32[512,16], index: 1, kind: input, shape index: {}]   ;;  %s592_s2 = inlined_call_operand.hbm [shape: f32[1,8,128], index: 2, kind: output, shape index: {}]  }
   0x1   :  { %v47_v0 = vld [vmem:[%s591_s1 + $0xf8] sm:$0xff]  ;;  %v46_v4 = vld [vmem:[%s591_s1 + $0xf0] sm:$0xff]  ;;  %v45_v8 = vld [vmem:[%s591_s1 + $0xe8] sm:$0xff] }
   0x2   :  { %v79_v1 = vld [vmem:[%s591_s1 + $0x1f8] sm:$0xff]  ;;  %277 = vmatprep.subr.mxu0 %v47_v0  ;;  %v78_v5 = vld [vmem:[%s591_s1 + $0x1f0] sm:$0xff]  ;;  %v77_v9 = vld [vmem:[%s591_s1 + $0x1e8] sm:$0xff]  ;;  %v82_v48 = vshrl.u32 %v81_v38, 7 }
   0x3   :  { %v31_v2 = vld [vmem:[%s591_s1 + $0x78] sm:$0xff]  ;;  %312 = vmatprep.subr.mxu1 %v79_v1  ;;  %v30_v6 = vld [vmem:[%s591_s1 + $0x70] sm:$0xff]  ;;  %v29_v10 = vld [vmem:[%s591_s1 + $0x68] sm:$0xff] }
   0x4   :  { %v63_v3 = vld [vmem:[%s591_s1 + $0x178] sm:$0xff]  ;;  %278 = vmatpush3.msra.mxu0 %v31_v2  ;;  %v62_v7 = vld [vmem:[%s591_s1 + $0x170] sm:$0xff]  ;;  %v61_v11 = vld [vmem:[%s591_s1 + $0x168] sm:$0xff] }
   0x5   :  { %313 = vmatpush3.msra.mxu1 %v63_v3  ;;  %279 = vmatprep.subr.mxu0 %v46_v4  ;;  %v44_v12 = vld [vmem:[%s591_s1 + $0xe0] sm:$0xff]  ;;  %v43_v16 = vld [vmem:[%s591_s1 + $0xd8] sm:$0xff]  ;;  %v42_v20 = vld [vmem:[%s591_s1 + $0xd0] sm:$0xff] }
   0x6   :  { %314 = vmatprep.subr.mxu1 %v78_v5  ;;  %280 = vmatpush3.msra.mxu0 %v30_v6  ;;  %v76_v13 = vld [vmem:[%s591_s1 + $0x1e0] sm:$0xff]  ;;  %v75_v17 = vld [vmem:[%s591_s1 + $0x1d8] sm:$0xff]  ;;  %v74_v21 = vld [vmem:[%s591_s1 + $0x1d0] sm:$0xff] }
   0x7   :  { %315 = vmatpush3.msra.mxu1 %v62_v7  ;;  %281 = vmatprep.subr.mxu0 %v45_v8  ;;  %v28_v14 = vld [vmem:[%s591_s1 + $0x60] sm:$0xff]  ;;  %v27_v18 = vld [vmem:[%s591_s1 + $0x58] sm:$0xff]  ;;  %v26_v22 = vld [vmem:[%s591_s1 + $0x50] sm:$0xff] }
   0x8   :  { %316 = vmatprep.subr.mxu1 %v77_v9  ;;  %v60_v15 = vld [vmem:[%s591_s1 + $0x160] sm:$0xff]  ;;  %282 = vmatpush3.msra.mxu0 %v29_v10  ;;  %v59_v19 = vld [vmem:[%s591_s1 + $0x158] sm:$0xff]  ;;  %v58_v23 = vld [vmem:[%s591_s1 + $0x150] sm:$0xff] }
   0x9   :  { %317 = vmatpush3.msra.mxu1 %v61_v11  ;;  %283 = vmatprep.subr.mxu0 %v44_v12  ;;  %v41_v24 = vld [vmem:[%s591_s1 + $0xc8] sm:$0xff]  ;;  %v40_v28 = vld [vmem:[%s591_s1 + $0xc0] sm:$0xff]  ;;  %v39_v32 = vld [vmem:[%s591_s1 + $0xb8] sm:$0xff] }
   0xa   :  { %318 = vmatprep.subr.mxu1 %v76_v13  ;;  %284 = vmatpush3.msra.mxu0 %v28_v14  ;;  %v73_v25 = vld [vmem:[%s591_s1 + $0x1c8] sm:$0xff]  ;;  %v72_v29 = vld [vmem:[%s591_s1 + $0x1c0] sm:$0xff]  ;;  %v71_v33 = vld [vmem:[%s591_s1 + $0x1b8] sm:$0xff] }
   0xb   :  { %319 = vmatpush3.msra.mxu1 %v60_v15  ;;  %285 = vmatprep.subr.mxu0 %v43_v16  ;;  %v25_v26 = vld [vmem:[%s591_s1 + $0x48] sm:$0xff]  ;;  %v24_v30 = vld [vmem:[%s591_s1 + $0x40] sm:$0xff]  ;;  %v23_v34 = vld [vmem:[%s591_s1 + $0x38] sm:$0xff] }
   0xc   :  { %320 = vmatprep.subr.mxu1 %v75_v17  ;;  %286 = vmatpush3.msra.mxu0 %v27_v18  ;;  %v57_v27 = vld [vmem:[%s591_s1 + $0x148] sm:$0xff]  ;;  %v56_v31 = vld [vmem:[%s591_s1 + $0x140] sm:$0xff]  ;;  %v55_v35 = vld [vmem:[%s591_s1 + $0x138] sm:$0xff] }
   0xd   :  { %321 = vmatpush3.msra.mxu1 %v59_v19  ;;  %287 = vmatprep.subr.mxu0 %v42_v20  ;;  %v38_v36 = vld [vmem:[%s591_s1 + $0xb0] sm:$0xff]  ;;  %v37_v41 = vld [vmem:[%s591_s1 + $0xa8] sm:$0xff]  ;;  %v36_v45 = vld [vmem:[%s591_s1 + $0xa0] sm:$0xff] }
   0xe   :  { %322 = vmatprep.subr.mxu1 %v74_v21  ;;  %288 = vmatpush3.msra.mxu0 %v26_v22  ;;  %v70_v37 = vld [vmem:[%s591_s1 + $0x1b0] sm:$0xff]  ;;  %v69_v42 = vld [vmem:[%s591_s1 + $0x1a8] sm:$0xff]  ;;  %v68_v46 = vld [vmem:[%s591_s1 + $0x1a0] sm:$0xff] }
   0xf   :  { %323 = vmatpush3.msra.mxu1 %v58_v23  ;;  %289 = vmatprep.subr.mxu0 %v41_v24  ;;  %v22_v39 = vld [vmem:[%s591_s1 + $0x30] sm:$0xff]  ;;  %v21_v43 = vld [vmem:[%s591_s1 + $0x28] sm:$0xff]  ;;  %v20_v47 = vld [vmem:[%s591_s1 + $0x20] sm:$0xff] }
  0x10   :  { %324 = vmatprep.subr.mxu1 %v73_v25  ;;  %290 = vmatpush3.msra.mxu0 %v25_v26  ;;  %v54_v40 = vld [vmem:[%s591_s1 + $0x130] sm:$0xff]  ;;  %v53_v44 = vld [vmem:[%s591_s1 + $0x128] sm:$0xff]  ;;  %v52_v49 = vld [vmem:[%s591_s1 + $0x120] sm:$0xff] }
  0x11   :  { %325 = vmatpush3.msra.mxu1 %v57_v27  ;;  %291 = vmatprep.subr.mxu0 %v40_v28  ;;  %v12_v50 = vld [vmem:[%s590_s0] sm:$0xf] }
  0x12   :  { %326 = vmatprep.subr.mxu1 %v72_v29  ;;  %292 = vmatpush3.msra.mxu0 %v24_v30 }
  0x13   :  { %327 = vmatpush3.msra.mxu1 %v56_v31  ;;  %293 = vmatprep.subr.mxu0 %v39_v32 }
  0x14   :  { %328 = vmatprep.subr.mxu1 %v71_v33  ;;  %294 = vmatpush3.msra.mxu0 %v23_v34 }
  0x15   :  { %329 = vmatpush3.msra.mxu1 %v55_v35  ;;  %295 = vmatprep.subr.mxu0 %v38_v36 }
  0x16   :  { %330 = vmatprep.subr.mxu1 %v70_v37  ;;  %296 = vmatpush3.msra.mxu0 %v22_v39 }
  0x17   :  { %331 = vmatpush3.msra.mxu1 %v54_v40  ;;  %297 = vmatprep.subr.mxu0 %v37_v41 }
  0x18   :  { %332 = vmatprep.subr.mxu1 %v69_v42 }
  0x19   :  { %7 = vsyncpa [#allocation3], 0  ;;  %298 = vmatpush3.msra.mxu0 %v21_v43  ;;  %333 = vmatpush3.msra.mxu1 %v53_v44  ;;  %v35_v51 = vld [vmem:[%s591_s1 + $0x98] sm:$0xff]  ;;  %vm13_vm0 = vcmp.ne.f32.partialorder %v12_v50, 0.0  ;;  %v34_v55 = vld [vmem:[%s591_s1 + $0x90] sm:$0xff]  ;;  %v87_v57 = vsub.s32 1, %v82_v48 }
  0x1a   :  { %v67_v52 = vld [vmem:[%s591_s1 + $0x198] sm:$0xff]  ;;  %299 = vmatprep.subr.mxu0 %v36_v45  ;;  %334 = vmatprep.subr.mxu1 %v68_v46  ;;  %v66_v56 = vld [vmem:[%s591_s1 + $0x190] sm:$0xff]  ;;  %v375_v60 = vmov 0.0   ;;  %v95_v62 = vsub.s32 3, %v82_v48  ;;  %v33_v63 = vld [vmem:[%s591_s1 + $0x88] sm:$0xff]  ;;  %v83_v1 = vsub.s32 0, %v82_v48 }
  0x1b   :  { %v19_v53 = vld [vmem:[%s591_s1 + $0x18] sm:$0xff]  ;;  %300 = vmatpush3.msra.mxu0 %v20_v47  ;;  %335 = vmatpush3.msra.mxu1 %v52_v49  ;;  %v18_v58 = vld [vmem:[%s591_s1 + $0x10] sm:$0xff]  ;;  %v276_v61 = vsel %vm13_vm0, 1.0, %v375_v60  ;;  %v65_v0 = vld [vmem:[%s591_s1 + $0x188] sm:$0xff]  ;;  %v91_v2 = vsub.s32 2, %v82_v48  ;;  %vm248_vm2 = vcmask 122880  }
  0x1c   :  { %v51_v54 = vld [vmem:[%s591_s1 + $0x118] sm:$0xff]  ;;  %301 = vmatprep.subr.mxu0 %v35_v51  ;;  %336 = vmatprep.subr.mxu1 %v67_v52  ;;  %v50_v59 = vld [vmem:[%s591_s1 + $0x110] sm:$0xff]  ;;  %v17_v3 = vld [vmem:[%s591_s1 + $0x8] sm:$0xff]  ;;  %v88_v7 = vrot.slane %v276_v61, %v87_v57  ;;  %v96_v9 = vrot.slane %v276_v61, %v95_v62  ;;  %v84_v11 = vrot.slane %v276_v61, %v83_v1 }
  0x1d   :  { %302 = vmatpush3.msra.mxu0 %v19_v53  ;;  %337 = vmatpush3.msra.mxu1 %v51_v54  ;;  %v49_v4 = vld [vmem:[%s591_s1 + $0x108] sm:$0xff]  ;;  %v32_v5 = vld [vmem:[%s591_s1 + $0x80] sm:$0xff]  ;;  %v92_v12 = vrot.slane %v276_v61, %v91_v2 }
  0x1e   :  { %303 = vmatprep.subr.mxu0 %v34_v55  ;;  %338 = vmatprep.subr.mxu1 %v66_v56  ;;  %v64_v6 = vld [vmem:[%s591_s1 + $0x180] sm:$0xff] }
  0x1f   :  { %304 = vmatpush3.msra.mxu0 %v18_v58  ;;  %339 = vmatpush3.msra.mxu1 %v50_v59  ;;  %v16_v8 = vld [vmem:[%s591_s1] sm:$0xff] }
  0x20   :  { %305 = vmatprep.subr.mxu0 %v33_v63  ;;  %340 = vmatprep.subr.mxu1 %v65_v0  ;;  %v48_v10 = vld [vmem:[%s591_s1 + $0x100] sm:$0xff]  ;;  %s376_s1 = smov [#allocation2]  }
  0x21   :  { %306 = vmatpush3.msra.mxu0 %v17_v3  ;;  %341 = vmatpush3.msra.mxu1 %v49_v4  ;;  %s268_s26 = sshll.u32 %s376_s1, 4  ;;  %s269_s26 = int_to_ptr.vmem [resolvable:$true] %s268_s26 }
  0x22   :  { %307 = vmatprep.subr.mxu0 %v32_v5  ;;  %342 = vmatprep.subr.mxu1 %v64_v6  ;;  %s353_s29 = scalar_lea.vmem %s269_s26, 128  ;;  %p358_p1 = scmp.lt.s32.totalorder %s269_s26, %s269_s26 }
  0x23   :  { %308 = vmatpush3.msra.mxu0 %v16_v8  ;;  %165 = vmatprep.mubr.f32.mxu0 %v88_v7  ;;  %p354_p0 = scmp.ne.s32.totalorder %s269_s26, %s353_s29  ;;  %p359_p2 = scmp.lt.s32.totalorder %s353_s29, %s353_s29 }
  0x24   :  { %343 = vmatpush3.msra.mxu1 %v48_v10  ;;  %235 = vmatprep.mubr.f32.mxu1 %v96_v9 }
  0x25   :  { %166 = vmatmul.mubr.f32.vlgmr.msra.gmra.mxu0 %v84_v11  ;;  %236 = vmatmul.mubr.f32.vlgmr.msra.gmra.mxu1 %v92_v12  ;;  %p360_p3 = por %p359_p2, %p358_p1 }
  0x27   :  { %p361_p4 = pnand %p360_p3, %p354_p0 }
  0xe5   :  { %v309_v13 = vpop.f32.mrf.mxu0  ;;  %v344_v14 = vpop.f32.mrf.mxu1 }
  0xe7   :  { %v310_v15 = vpop.f32.mrf.mxu0  ;;  %v345_v16 = vpop.f32.mrf.mxu1 }
  0xe8   :  { %v311_v17 = vadd.f32 %v310_v15, %v309_v13  ;;  %v346_v18 = vadd.f32 %v345_v16, %v344_v14 }
  0xea   :  { %v238_v19 = vadd.f32 %v346_v18, %v311_v17 }
  0xec   :  { %351 = vrsqrt.f32 %v238_v19  ;;  %vm243_vm1 = vcmp.eq.f32.partialorder %v238_v19, inf  ;;  %v246_v22 = vand.u32 2147483648, %v238_v19  ;;  %vm245_vm3 = vcmp.eq.f32.partialorder %v238_v19, 0.0 }
  0xf9   :  { %v352_v20 = vpop.eup %351 }
  0xfa   :  { %v242_v21 = vmul.f32 %v352_v20, %v238_v19 }
  0xfc   :  { %v244_v23 = vsel %vm243_vm1, %v238_v19, %v242_v21 }
  0xfd   :  { %v247_v24 = vsel %vm245_vm3, %v246_v22, %v244_v23 }
  0xfe   :  { %v249_v25 = vsel %vm248_vm2, %v247_v24, 0.0 }
  0xff   :  { %250 = vadd.xlane.f32.xlu0 %v249_v25 }
 0x188   :  { %v251_v26 = vpop.xlane.xlu0 %250 }
 0x189   :  { %v252_v27 = vrot.slane %v251_v26, 4 }
 0x18b   :  { %v253_v28 = vadd.f32 %v252_v27, %v251_v26 }
 0x18d   :  { %v254_v29 = vrot.slane %v253_v28, 2 }
 0x18f   :  { %v255_v30 = vadd.f32 %v254_v29, %v253_v28 }
 0x191   :  { %v256_v31 = vrot.slane %v255_v30, 1 }
 0x193   :  { %v257_v32 = vadd.f32 %v256_v31, %v255_v30 }
 0x195   :  { %347 = vpush %v257_v32 }
 0x1c6   :  { %s348_s27 = spop %347 }
 0x1c7   :  { %s259_s28 = smul.f32 0.05, %s348_s27 }
 0x1c9   :  { %v260_v33 = vstv %s259_s28 }
 0x1ca   :  { %261 = vst [vmem:[#allocation2] sm:$0xff] %v260_v33 }
 0x1cb   :  { %364 = shalt.err (!%p361_p4)
}
 0x1cc   :  { %271 = dma.vmem_to_hbm [thread:$0]  %s269_s26, 128, %s592_s2, [#allocation3]  }
 0x1cd   :  { %373 = dma.done.wait [#allocation3], 128  }
 0x1ce   :  { %374 = vsyncadd [#allocation3], 4294967168 }
 0x1cf   :  { %275 = vsyncpa [#allocation3], 1 }

</bundles_post_ra>
